<compile_context>
chip_gen: v7x
topology: tpu7x:2x2x1
jax: 0.10.0
libtpu: 0.0.40
codegen_flags: <defaults>
</compile_context>

<pallas_src>
import jax
import jax.numpy as jnp
from jax.experimental import pallas as pl
from jax.experimental.pallas import tpu as pltpu


def masked_l1_loss(x, y, mask):
    """x, y: (N, C, H, W); mask: (N, 1, H, W).  Returns scalar mean L1 (f32)."""
    n, c, h, w = x.shape
    assert y.shape == x.shape
    assert mask.shape == (n, 1, h, w)
    if mask.dtype == jnp.bool_:
        mask = mask.astype(x.dtype)          # mask is C-times smaller; cheap

    s = h * w
    x3 = x.reshape(n, c, s)
    y3 = y.reshape(n, c, s)
    m3 = mask.reshape(n, 1, s)

    # Lane-dense spatial view: flat spatial -> (R, 128) rows.
    if s % 128:
        # TODO(synk): stream ragged (non-128-multiple) spatial extents without
        # this (rare, minimal) pad copy; zero-padded mask keeps the sum exact.
        pad = 128 - s % 128
        x3 = jnp.pad(x3, ((0, 0), (0, 0), (0, pad)))
        y3 = jnp.pad(y3, ((0, 0), (0, 0), (0, pad)))
        m3 = jnp.pad(m3, ((0, 0), (0, 0), (0, pad)))
        s = s + pad
    r = s // 128
    x4 = x3.reshape(n, c, r, 128)
    y4 = y3.reshape(n, c, r, 128)
    m4 = m3.reshape(n, 1, r, 128)

    bx = x.dtype.itemsize
    bm = m4.dtype.itemsize

    # Sublane multiple: 8 for f32, 16 for bf16/f16, 32 for 8-bit inputs.
    pack = max(4 // min(bx, 4), 4 // min(bm, 4), 1)
    mult = 8 * pack

    # ~3 MiB of real x-block data per grid step (mem-bound sweet spot).
    tr_target = max(mult, ((3 << 20) // (c * 128 * bx)) // mult * mult)
    tr = r if r <= tr_target else tr_target      # full dim is always legal
    rb_total = -(-r // tr)                        # number of spatial row-blocks

    # Parallel axes: batch, plus an outer spatial split when N == 1 so both
    # v7x TensorCores get work.
    g_out = 1 if n >= 2 else min(2, rb_total)
    g_in = -(-rb_total // g_out)
    padded_grid = (g_out * g_in) != rb_total
    needs_tail = padded_grid or (r % tr != 0)
    vpu_reduce = (tr % 8) == 0

    def _row_block(go, gi):
        rbi = go * g_in + gi
        if padded_grid:
            rbi = jnp.minimum(rbi, rb_total - 1)  # duplicate block; iota zeroes it
        return rbi

    def kernel(x_ref, y_ref, m_ref, o_ref):
        gi = pl.program_id(2)

        @pl.when(gi == 0)
        def _init():
            o_ref[...] = jnp.zeros_like(o_ref)

        x_t = x_ref[...].astype(jnp.float32)      # (c, tr, 128) — in-kernel cast
        y_t = y_ref[...].astype(jnp.float32)
        m_t = m_ref[...].astype(jnp.float32)      # (1, tr, 128), broadcasts over c
        d = jnp.abs((x_t - y_t) * m_t)            # one VPU mul per element

        if needs_tail:
            # OOB / duplicated rows must be masked with an iota predicate
            # (their block contents — including the mask — are unspecified).
            row0 = (pl.program_id(1) * g_in + gi) * tr
            rows = jax.lax.broadcasted_iota(jnp.int32, (1, tr, 128), 1)
            d = jnp.where(row0 + rows < r, d, 0.0)

        ds = jnp.sum(d, axis=0)                   # (tr, 128): vreg adds over C
        if vpu_reduce:
            # Pure-VPU vreg accumulation; no cross-lane XLU reduce per step.
            o_ref[...] += jnp.sum(ds.reshape(tr // 8, 8, 128), axis=0)
        else:
            # Tiny-tile fallback (tr == R < 8): scalar accumulate.
            o_ref[0:1, 0:1] += jnp.sum(ds).reshape(1, 1)

    # Explicit VMEM budget: double-buffered x/y/mask blocks + headroom.
    step_bytes = (2 * c * bx + bm) * tr * 128
    vmem_limit = int(min(max(2 * step_bytes + (6 << 20), 16 << 20), 30 << 20))

    partials = pl.pallas_call(
        kernel,
        out_shape=jax.ShapeDtypeStruct((n, g_out, 8, 128), jnp.float32),
        grid=(n, g_out, g_in),
        in_specs=[
            pl.BlockSpec((None, c, tr, 128),
                         lambda b, go, gi: (b, 0, _row_block(go, gi), 0)),
            pl.BlockSpec((None, c, tr, 128),
                         lambda b, go, gi: (b, 0, _row_block(go, gi), 0)),
            pl.BlockSpec((None, 1, tr, 128),
                         lambda b, go, gi: (b, 0, _row_block(go, gi), 0)),
        ],
        # Same block across the inner (reduction) axis -> resident accumulator.
        out_specs=pl.BlockSpec((None, None, 8, 128),
                               lambda b, go, gi: (b, go, 0, 0)),
        compiler_params=pltpu.CompilerParams(
            dimension_semantics=("parallel", "parallel", "arbitrary"),
            vmem_limit_bytes=vmem_limit),
    )(x4, y4, m4)

    # nn.L1Loss default reduction='mean' over all N*C*H*W (original) elements.
    return jnp.sum(partials) / float(n * c * h * w)


if __name__ == "__main__":
    key = jax.random.PRNGKey(0)
    kx, ky, km = jax.random.split(key, 3)
    n, c, h, w = 2, 4, 16, 16
    x = jax.random.normal(kx, (n, c, h, w), jnp.float32)
    y = jax.random.normal(ky, (n, c, h, w), jnp.float32)
    mask = (jax.random.uniform(km, (n, 1, h, w)) > 0.5).astype(jnp.float32)

    loss = jax.jit(masked_l1_loss)(x, y, mask)
    jax.block_until_ready(loss)

    # Reference check against the PyTorch semantics (mask expanded over C).
    m_b = jnp.broadcast_to(mask, x.shape)
    ref = jnp.mean(jnp.abs(x * m_b - y * m_b))
    assert jnp.allclose(loss, ref, rtol=1e-5, atol=1e-6), (loss, ref)

    print("KERNEL_OK")
</pallas_src>

<mosaic_0001>
module attributes {stable_mosaic.version = 11 : i64} {
  func.func @kernel(%arg0: i32, %arg1: i32, %arg2: i32, %arg3: memref<1x4x2x128xf32, #tpu.memory_space<vmem>>, %arg4: memref<1x4x2x128xf32, #tpu.memory_space<vmem>>, %arg5: memref<1x1x2x128xf32, #tpu.memory_space<vmem>>, %arg6: memref<1x1x8x128xf32, #tpu.memory_space<vmem>>) attributes {dimension_semantics = [#tpu.dimension_semantics<parallel>, #tpu.dimension_semantics<parallel>, #tpu.dimension_semantics<arbitrary>], iteration_bounds = array<i64: 2, 1, 1>, scalar_prefetch = 0 : i64, scratch_operands = 0 : i64, tpu.core_type = #tpu.core_type<tc>, window_params = [{transform_indices = @transform_0, window_bounds = array<i64: 1, 4, 2, 128>}, {transform_indices = @transform_1, window_bounds = array<i64: 1, 4, 2, 128>}, {transform_indices = @transform_2, window_bounds = array<i64: 1, 1, 2, 128>}, {transform_indices = @transform_3, window_bounds = array<i64: 1, 1, 8, 128>}]} {
    %c0_i32 = arith.constant 0 : i32
    %0 = arith.cmpi eq, %arg2, %c0_i32 : i32
    %1 = arith.extui %0 : i1 to i32
    %c0_i32_0 = arith.constant 0 : i32
    %2 = arith.cmpi ne, %1, %c0_i32_0 : i32
    scf.if %2 {
      %cst_21 = arith.constant 0.000000e+00 : f32
      %25 = vector.broadcast %cst_21 : f32 to vector<8x128xf32>
      %c0_22 = arith.constant 0 : index
      %c0_23 = arith.constant 0 : index
      %c0_24 = arith.constant 0 : index
      %c0_25 = arith.constant 0 : index
      %26 = vector.load %arg6[%c0_22, %c0_23, %c0_24, %c0_25] : memref<1x1x8x128xf32, #tpu.memory_space<vmem>>, vector<1x1x8x128xf32>
      %27 = vector.shape_cast %26 : vector<1x1x8x128xf32> to vector<8x128xf32>
      %28 = vector.shape_cast %25 : vector<8x128xf32> to vector<1x1x8x128xf32>
      tpu.vector_store %arg6[%c0_22, %c0_23, %c0_24, %c0_25], %28 {strides = array<i32>} : memref<1x1x8x128xf32, #tpu.memory_space<vmem>>, vector<1x1x8x128xf32>,
    } else {
    }
    %c0 = arith.constant 0 : index
    %c0_1 = arith.constant 0 : index
    %c0_2 = arith.constant 0 : index
    %c0_3 = arith.constant 0 : index
    %3 = vector.load %arg3[%c0, %c0_1, %c0_2, %c0_3] : memref<1x4x2x128xf32, #tpu.memory_space<vmem>>, vector<1x4x2x128xf32>
    %4 = vector.shape_cast %3 : vector<1x4x2x128xf32> to vector<4x2x128xf32>
    %c0_4 = arith.constant 0 : index
    %c0_5 = arith.constant 0 : index
    %c0_6 = arith.constant 0 : index
    %c0_7 = arith.constant 0 : index
    %5 = vector.load %arg4[%c0_4, %c0_5, %c0_6, %c0_7] : memref<1x4x2x128xf32, #tpu.memory_space<vmem>>, vector<1x4x2x128xf32>
    %6 = vector.shape_cast %5 : vector<1x4x2x128xf32> to vector<4x2x128xf32>
    %c0_8 = arith.constant 0 : index
    %c0_9 = arith.constant 0 : index
    %c0_10 = arith.constant 0 : index
    %c0_11 = arith.constant 0 : index
    %7 = vector.load %arg5[%c0_8, %c0_9, %c0_10, %c0_11] : memref<1x1x2x128xf32, #tpu.memory_space<vmem>>, vector<1x1x2x128xf32>
    %8 = vector.shape_cast %7 : vector<1x1x2x128xf32> to vector<1x2x128xf32>
    %9 = arith.subf %4, %6 : vector<4x2x128xf32>
    %10 = vector.broadcast %8 : vector<1x2x128xf32> to vector<4x2x128xf32>
    %11 = arith.mulf %9, %10 : vector<4x2x128xf32>
    %12 = math.absf %11 : vector<4x2x128xf32>
    %cst = arith.constant dense<0.000000e+00> : vector<2x128xf32>
    %13 = vector.multi_reduction <add>, %12, %cst [0] : vector<4x2x128xf32> to vector<2x128xf32>
    %c0_12 = arith.constant 0 : index
    %c0_13 = arith.constant 0 : index
    %c0_14 = arith.constant 0 : index
    %c0_15 = arith.constant 0 : index
    %14 = vector.load %arg6[%c0_12, %c0_13, %c0_14, %c0_15] : memref<1x1x8x128xf32, #tpu.memory_space<vmem>>, vector<1x1x1x1xf32>
    %15 = vector.shape_cast %14 : vector<1x1x1x1xf32> to vector<1x1xf32>
    %16 = vector.shape_cast %13 : vector<2x128xf32> to vector<1x2x128xf32>
    %cst_16 = arith.constant dense<0.000000e+00> : vector<1xf32>
    %17 = vector.multi_reduction <add>, %16, %cst_16 [1, 2] : vector<1x2x128xf32> to vector<1xf32>
    %18 = vector.shape_cast %17 : vector<1xf32> to vector<1x1x1xf32>
    %19 = vector.extract %18[0, 0, 0] : f32 from vector<1x1x1xf32>
    %20 = vector.broadcast %19 : f32 to vector<1x1xf32>
    %21 = arith.addf %15, %20 : vector<1x1xf32>
    %c0_17 = arith.constant 0 : index
    %c0_18 = arith.constant 0 : index
    %c0_19 = arith.constant 0 : index
    %c0_20 = arith.constant 0 : index
    %22 = vector.load %arg6[%c0_17, %c0_18, %c0_19, %c0_20] : memref<1x1x8x128xf32, #tpu.memory_space<vmem>>, vector<1x1x1x1xf32>
    %23 = vector.shape_cast %22 : vector<1x1x1x1xf32> to vector<1x1xf32>
    %24 = vector.shape_cast %21 : vector<1x1xf32> to vector<1x1x1x1xf32>
    tpu.vector_store %arg6[%c0_17, %c0_18, %c0_19, %c0_20], %24 {strides = array<i32>} : memref<1x1x8x128xf32, #tpu.memory_space<vmem>>, vector<1x1x1x1xf32>,
    return
  }
  func.func @transform_0(%arg0: i32, %arg1: i32, %arg2: i32) -> (i32, i32, i32, i32) {
    %c1_i32 = arith.constant 1 : i32
    %0 = arith.muli %arg1, %c1_i32 : i32
    %1 = arith.addi %0, %arg2 : i32
    %c0_i32 = arith.constant 0 : i32
    %c0_i32_0 = arith.constant 0 : i32
    %c0_i32_1 = arith.constant 0 : i32
    return %arg0, %c0_i32, %1, %c0_i32_0 : i32, i32, i32, i32
  }
  func.func @transform_1(%arg0: i32, %arg1: i32, %arg2: i32) -> (i32, i32, i32, i32) {
    %c1_i32 = arith.constant 1 : i32
    %0 = arith.muli %arg1, %c1_i32 : i32
    %1 = arith.addi %0, %arg2 : i32
    %c0_i32 = arith.constant 0 : i32
    %c0_i32_0 = arith.constant 0 : i32
    %c0_i32_1 = arith.constant 0 : i32
    return %arg0, %c0_i32, %1, %c0_i32_0 : i32, i32, i32, i32
  }
  func.func @transform_2(%arg0: i32, %arg1: i32, %arg2: i32) -> (i32, i32, i32, i32) {
    %c1_i32 = arith.constant 1 : i32
    %0 = arith.muli %arg1, %c1_i32 : i32
    %1 = arith.addi %0, %arg2 : i32
    %c0_i32 = arith.constant 0 : i32
    %c0_i32_0 = arith.constant 0 : i32
    %c0_i32_1 = arith.constant 0 : i32
    return %arg0, %c0_i32, %1, %c0_i32_0 : i32, i32, i32, i32
  }
  func.func @transform_3(%arg0: i32, %arg1: i32, %arg2: i32) -> (i32, i32, i32, i32) {
    %c0_i32 = arith.constant 0 : i32
    %c0_i32_0 = arith.constant 0 : i32
    %c0_i32_1 = arith.constant 0 : i32
    return %arg0, %arg1, %c0_i32, %c0_i32_0 : i32, i32, i32, i32
  }
}

</mosaic_0001>

<bundles_post_ra>
// kernel: masked_l1_loss.1
= control target key start
LH: loop header
LB: loop body
LE: loop exit
PB: predicated region body
PF: predicated region fallthrough
CT: control target
= control target key end

     0   :  { %s536_s12 = smov 0   ;;  %s538_s13 = smov 0   ;;  %s580_s0 = inlined_call_operand.vmem [shape: f32[2,4,2,128], index: 0, kind: input, shape index: {}]   ;;  %s581_s1 = inlined_call_operand.vmem [shape: f32[2,4,2,128], index: 1, kind: input, shape index: {}]   ;;  %s582_s2 = inlined_call_operand.vmem [shape: f32[2,1,2,128], index: 2, kind: input, shape index: {}]   ;;  %s583_s3 = inlined_call_operand.vmem [shape: f32[2,1,8,128], index: 3, kind: output, shape index: {}]  }
   0x1   :  { %s540_s14 = smov 0  }
   0x2 LB: > { %s32_s15 = sadd.s32 1, %s509_s13  ;;  %p453_p0 = scmp.ge.s32.totalorder %s513_s14, 1  ;;  %s513_s14 = sphi %s540_s14, %s13_s14   ;;  %s509_s13 = sphi %s538_s13, %s585_s13   ;;  %s505_s12 = sphi %s536_s12, %s584_s12  }
   0x3   : > { %p34_p1 = scmp.ge.s32.totalorder %s32_s15, 2  ;;  %p204_p2 = scmp.lt.s32.totalorder %s513_s14, 3 }
   0x5   : > { %s587_s15 = smov (%p34_p1, %s32_s15), 0  ;;  %p205_p3 = pnand %p453_p0, %p204_p2 }
   0x6   : > { %p252_p4 = scmp.lt.s32.totalorder (!%p205_p3), %s505_s12, 1  ;;  %vm313_vm0 = vcmask (!%p205_p3), 1041408   ;;  %v515_v29 = vmov (!%p205_p3), 0.0   ;;  %vm334_vm1 = vcmask (!%p205_p3), 0  }
   0x7   : > { %208 = sbr.rel (%p205_p3) target bundleno = 241 (0xf1), region = 32 }
   0xe   : > { %s589_s12 = smov (!%p252_p4, %s505_s12), 1 }
   0xf   : > { %s554_s16 = sshll.u32 %s589_s12, 3  ;;  %s458_s17 = sshll.u32 %s589_s12, 1 }
  0x10   : > { %s259_s20 = scalar_lea.vmem %s580_s0, %s554_s16  ;;  %s269_s23 = scalar_lea.vmem %s581_s1, %s554_s16 }
  0x11   : > { %s278_s26 = scalar_lea.vmem %s582_s2, %s458_s17  ;;  %v292_v0 = vld [vmem:[%s259_s20] sm:$0x3]  ;;  %v293_v1 = vld [vmem:[%s259_s20 + $0x2] sm:$0x3]  ;;  %v294_v2 = vld [vmem:[%s259_s20 + $0x4] sm:$0x3]  ;;  %s286_s29 = scalar_lea.vmem %s583_s3, %s554_s16 }
  0x12   : > { %v295_v3 = vld [vmem:[%s259_s20 + $0x6] sm:$0x3]  ;;  %v296_v4 = vld [vmem:[%s269_s23] sm:$0x3]  ;;  %v297_v5 = vld [vmem:[%s269_s23 + $0x2] sm:$0x3]  ;;  %291 = vst [vmem:[%s286_s29] sm:$0xff] %v515_v29 }
  0x13   : > { %v298_v6 = vld [vmem:[%s269_s23 + $0x4] sm:$0x3]  ;;  %v299_v7 = vld [vmem:[%s269_s23 + $0x6] sm:$0x3]  ;;  %v300_v8 = vld [vmem:[%s278_s26] sm:$0x3]  ;;  %v301_v9 = vsub.f32 %v292_v0, %v296_v4  ;;  %v302_v10 = vsub.f32 %v293_v1, %v297_v5 }
  0x14   : > { %v303_v11 = vsub.f32 %v294_v2, %v298_v6  ;;  %v304_v12 = vsub.f32 %v295_v3, %v299_v7 }
  0x15   : > { %v305_v13 = vmul.f32 %v301_v9, %v300_v8  ;;  %v306_v14 = vmul.f32 %v302_v10, %v300_v8 }
  0x16   : > { %v307_v15 = vmul.f32 %v303_v11, %v300_v8  ;;  %v308_v16 = vmul.f32 %v304_v12, %v300_v8 }
  0x17   : > { %v309_v17 = vand.u32 2147483647, %v305_v13  ;;  %v310_v18 = vand.u32 2147483647, %v306_v14 }
  0x18   : > { %v311_v19 = vand.u32 2147483647, %v307_v15  ;;  %v312_v20 = vand.u32 2147483647, %v308_v16 }
  0x19   : > { %v314_v21 = vsel %vm313_vm0, %v309_v17, 0.0  ;;  %v315_v22 = vsel %vm313_vm0, %v310_v18, 0.0  ;;  %v321_v37 = vld [vmem:[%s286_s29] sm:$0x1] }
  0x1a   : > { %v316_v23 = vadd.f32 %v315_v22, %v314_v21  ;;  %v317_v24 = vsel %vm313_vm0, %v311_v19, 0.0  ;;  %v319_v25 = vsel %vm313_vm0, %v312_v20, 0.0 }
  0x1c   : > { %v318_v26 = vadd.f32 %v317_v24, %v316_v23 }
  0x1e   : > { %v320_v27 = vadd.f32 %v319_v25, %v318_v26 }
  0x20   : > { %v322_v28 = vsel %vm313_vm0, %v320_v27, 0.0 }
  0x21   : > { %323 = vadd.xlane.f32.xlu0 %v322_v28 }
  0xae   : > { %v324_v30 = vpop.xlane.xlu0 %323 }
  0xaf   : > { %v325_v31 = vrot.slane %v324_v30, 4 }
  0xb1   : > { %v326_v32 = vadd.f32 %v325_v31, %v324_v30 }
  0xb3   : > { %v327_v33 = vrot.slane %v326_v32, 2 }
  0xb5   : > { %v328_v34 = vadd.f32 %v327_v33, %v326_v32 }
  0xb7   : > { %v329_v35 = vrot.slane %v328_v34, 1 }
  0xb9   : > { %v330_v36 = vadd.f32 %v329_v35, %v328_v34 }
  0xbb   : > { %464 = vpush %v330_v36 }
  0xec   : > { %s465_s30 = spop %464 }
  0xed   : > { %v332_v38 = vstv %s465_s30 }
  0xee   : > { %v333_v39 = vadd.f32 %v332_v38, %v321_v37 }
  0xf0   : > { %335 = vst.msk [vmem:[%s286_s29] sm:$0x1] %vm334_vm1, %v333_v39 }
  0xf1 PF: > { %s13_s14 = sadd.s32 1, %s513_s14   ;;  %s584_s12 = smov %s509_s13 }
  0xf2   : > { %p10_p5 = scmp.ge.s32.totalorder %s13_s14, 4   ;;  %s585_s13 = smov %s587_s15 }
  0xf4   :  { %12 = sbr.rel (!%p10_p5) target bundleno = 2 (0x2), region = 72 }

</bundles_post_ra>
